<compile_context>
chip_gen: v6e
topology: v6e:2x2x1
jax: 0.10.0
libtpu: 0.0.40
codegen_flags: <defaults>
</compile_context>

<pallas_src>
import functools

import jax
import jax.numpy as jnp
from jax import lax
from jax.experimental import pallas as pl
from jax.experimental.pallas import tpu as pltpu


def _round_up(a, b):
    return ((a + b - 1) // b) * b


def _largest_div_tile(n, cap):
    """Largest multiple-of-128 divisor of n (n a multiple of 128) that is <= cap."""
    best = 128
    t = 128
    while t <= min(n, cap):
        if n % t == 0:
            best = t
        t += 128
    return best


# -----------------------------------------------------------------------------
# Prefill kernels:  grid = (M//tm, N//tn, K//tk), K (reduction) innermost,
# f32 VMEM accumulator resident across the K axis.
# -----------------------------------------------------------------------------
def _mm_nk_kernel(x_ref, w_ref, o_ref, acc_ref):
    """x:(tm,tk) bf16, w:(tn,tk) bf16 (Linear layout), o:(tm,tn)."""
    @pl.when(pl.program_id(2) == 0)
    def _():
        acc_ref[...] = jnp.zeros_like(acc_ref)

    # Contract the LAST dim of both operands (the flash-attention q@k.T
    # pattern): bf16 x bf16 -> f32 straight on the MXU, no operand transpose.
    acc_ref[...] += lax.dot_general(
        x_ref[...], w_ref[...],
        dimension_numbers=(((1,), (1,)), ((), ())),
        preferred_element_type=jnp.float32,
    )

    @pl.when(pl.program_id(2) == pl.num_programs(2) - 1)
    def _():
        o_ref[...] = acc_ref[...].astype(o_ref.dtype)


def _mm_kn_kernel(x_ref, w_ref, o_ref, acc_ref):
    """x:(tm,tk) bf16, w:(tk,tn) bf16 (pre-transposed, MXU-native RHS)."""
    @pl.when(pl.program_id(2) == 0)
    def _():
        acc_ref[...] = jnp.zeros_like(acc_ref)

    acc_ref[...] += jnp.dot(x_ref[...], w_ref[...],
                            preferred_element_type=jnp.float32)

    @pl.when(pl.program_id(2) == pl.num_programs(2) - 1)
    def _():
        o_ref[...] = acc_ref[...].astype(o_ref.dtype)


@functools.partial(jax.jit,
                   static_argnames=("w_layout", "n_valid", "tm", "tn", "tk"))
def _matmul_tiled(x2d, w, w_layout, n_valid, tm, tn, tk):
    """Pad to tile multiples, run the tiled Pallas matmul, slice back."""
    M, Kx = x2d.shape
    if w_layout == "nk":
        N, Kw = w.shape
    else:
        Kw, N = w.shape
    # Allow a pre-padded / oversized weight K: zero-padding x's K is exact.
    K = max(Kx, Kw)

    Mp, Np, Kp = _round_up(M, tm), _round_up(N, tn), _round_up(K, tk)

    if (Mp, Kp) != (M, Kx):
        x2d = jnp.pad(x2d, ((0, Mp - M), (0, Kp - Kx)))
    if w_layout == "nk":
        if (Np, Kp) != (N, Kw):
            w = jnp.pad(w, ((0, Np - N), (0, Kp - Kw)))
        w_spec = pl.BlockSpec((tn, tk), lambda i, j, k: (j, k))
        kernel = _mm_nk_kernel
    else:
        if (Kp, Np) != (Kw, N):
            w = jnp.pad(w, ((0, Kp - Kw), (0, Np - N)))
        w_spec = pl.BlockSpec((tk, tn), lambda i, j, k: (k, j))
        kernel = _mm_kn_kernel

    isz = jnp.dtype(x2d.dtype).itemsize
    wsz = jnp.dtype(w.dtype).itemsize
    grid = (Mp // tm, Np // tn, Kp // tk)

    # double-buffered inputs + double-buffered output + f32 accumulator,
    # with headroom for Mosaic internal scratch.
    vmem_bytes = (2 * (tm * tk * isz + tn * tk * wsz)
                  + 2 * tm * tn * isz + tm * tn * 4)
    vmem_limit = min(int(vmem_bytes * 3 // 2) + (8 << 20), 64 << 20)

    cost = pl.CostEstimate(
        flops=2 * Mp * Np * Kp,
        transcendentals=0,
        bytes_accessed=Mp * Kp * isz + Np * Kp * wsz + Mp * Np * isz)

    out = pl.pallas_call(
        kernel,
        out_shape=jax.ShapeDtypeStruct((Mp, Np), x2d.dtype),
        grid_spec=pltpu.PrefetchScalarGridSpec(
            num_scalar_prefetch=0,
            grid=grid,
            in_specs=[
                pl.BlockSpec((tm, tk), lambda i, j, k: (i, k)),   # x tile
                w_spec,                                           # W tile
            ],
            out_specs=pl.BlockSpec((tm, tn), lambda i, j, k: (i, j)),
            scratch_shapes=[pltpu.VMEM((tm, tn), jnp.float32)]),
        compiler_params=pltpu.CompilerParams(
            dimension_semantics=("parallel", "parallel", "arbitrary"),
            vmem_limit_bytes=vmem_limit),
        cost_estimate=cost,
    )(x2d, w)

    if (Mp, Np) != (M, n_valid):
        out = out[:M, :n_valid]
    return out


# -----------------------------------------------------------------------------
# Decode (matvec) kernels:  grid = (N//tn,), full K in one block, no acc
# scratch / no K init-finalize branches.  HBM-bound on streaming W.
# -----------------------------------------------------------------------------
def _mv_nk_kernel(x_ref, w_ref, o_ref):
    o_ref[...] = lax.dot_general(
        x_ref[...], w_ref[...],
        dimension_numbers=(((1,), (1,)), ((), ())),
        preferred_element_type=jnp.float32,
    ).astype(o_ref.dtype)


def _mv_kn_kernel(x_ref, w_ref, o_ref):
    o_ref[...] = jnp.dot(x_ref[...], w_ref[...],
                         preferred_element_type=jnp.float32).astype(o_ref.dtype)


@functools.partial(jax.jit, static_argnames=("w_layout", "n_valid", "tn"))
def _matvec(x2d, w, w_layout, n_valid, tn):
    M, Kx = x2d.shape
    if w_layout == "nk":
        N, Kw = w.shape
    else:
        Kw, N = w.shape
    Kp = _round_up(max(Kx, Kw), 128)
    Np = _round_up(N, tn)
    TM = 8   # native sublane tile -> unmasked stores; the 8x MXU work is free.

    if (M, Kx) != (TM, Kp):
        x2d = jnp.pad(x2d, ((0, TM - M), (0, Kp - Kx)))
    # W is expected pre-padded at (re)filter time; this pad is a correctness
    # fallback only and should not trigger on the decode hot loop.
    if w_layout == "nk":
        if (N, Kw) != (Np, Kp):
            w = jnp.pad(w, ((0, Np - N), (0, Kp - Kw)))
        w_spec = pl.BlockSpec((tn, Kp), lambda j: (j, 0))
        kernel = _mv_nk_kernel
    else:
        if (Kw, N) != (Kp, Np):
            w = jnp.pad(w, ((0, Kp - Kw), (0, Np - N)))
        w_spec = pl.BlockSpec((Kp, tn), lambda j: (0, j))
        kernel = _mv_kn_kernel

    isz = jnp.dtype(x2d.dtype).itemsize
    wsz = jnp.dtype(w.dtype).itemsize
    vmem_bytes = 2 * (TM * Kp * isz + tn * Kp * wsz) + 2 * TM * tn * isz
    vmem_limit = min(int(vmem_bytes * 3 // 2) + (8 << 20), 64 << 20)

    cost = pl.CostEstimate(
        flops=2 * TM * Np * Kp,
        transcendentals=0,
        bytes_accessed=TM * Kp * isz + Np * Kp * wsz + TM * Np * isz)

    # TODO(synk): optionally pipeline_mode=pl.Buffered(3) on the W spec to hide
    # DMA bubbles between grid steps (small win, costs one extra W buffer).
    out = pl.pallas_call(
        kernel,
        out_shape=jax.ShapeDtypeStruct((TM, Np), x2d.dtype),
        grid_spec=pltpu.PrefetchScalarGridSpec(
            num_scalar_prefetch=0,
            grid=(Np // tn,),
            in_specs=[
                pl.BlockSpec((TM, Kp), lambda j: (0, 0)),   # x resident
                w_spec,
            ],
            out_specs=pl.BlockSpec((TM, tn), lambda j: (0, j))),
        compiler_params=pltpu.CompilerParams(
            dimension_semantics=("parallel",),
            vmem_limit_bytes=vmem_limit),
        cost_estimate=cost,
    )(x2d, w)

    return out[:M, :n_valid]


# -----------------------------------------------------------------------------
# Dispatch: pick tiles / path based on (M, N, K)
# -----------------------------------------------------------------------------
def matmul_x_wt(x2d, w, *, w_layout="nk", n_valid=None):
    """y = x2d @ W.T (w_layout='nk', torch Linear layout (N, K))
       or  y = x2d @ W   (w_layout='kn', pre-transposed (K, N)).
       n_valid: slice the output's N dim (for pre-padded filtered weights)."""
    M, K = x2d.shape
    N = w.shape[0] if w_layout == "nk" else w.shape[1]
    if n_valid is None:
        n_valid = N
    Kp = _round_up(K, 128)
    Np128 = _round_up(N, 128)

    if M <= 8 and Kp <= 16384:
        # ---- decode matvec: single full-K block, grid over N only ----------
        # keep the double-buffered bf16 weight block <= ~8 MiB
        cap_elems = (8 << 20) // (2 * 2)
        tn_cap = max(128, (cap_elems // Kp) // 128 * 128)
        tn = min(512, tn_cap, Np128)
        if Np128 >= 256:
            # v7x: >= 2 N blocks so both TensorCores get work
            tn = min(tn, _round_up(Np128 // 2, 128))
        # choose a divisor of the (pre-padded) N so no per-call weight pad
        tn = _largest_div_tile(Np128, tn)
        return _matvec(x2d, w, w_layout, n_valid, tn)

    # ---- prefill: big tiles to minimize HBM re-streaming --------------------
    tm = min(1024, _round_up(M, 8))
    tk = min(512, Kp)
    tn = min(1024, Np128)
    if _round_up(M, tm) // tm < 2 and Np128 >= 256:
        # only one M block: keep >= 2 N blocks so megacore still shards work
        tn = min(tn, _round_up(Np128 // 2, 128))
    return _matmul_tiled(x2d, w, w_layout, n_valid, tm, tn, tk)


# -----------------------------------------------------------------------------
# Glue: core-neuron selection + the CustomMLPLayer state machine
# -----------------------------------------------------------------------------
def get_core_neurons(token_x, token_sparsity, sparsity, total_neurons):
    # TODO(synk): `common.get_core_neurons` source is unavailable; approximate
    # with top-k neurons by summed |activation| over tokens, k = total*sparsity.
    del token_sparsity
    scores = jnp.sum(jnp.abs(token_x.astype(jnp.float32)), axis=0)
    k = max(1, int(total_neurons * sparsity))
    _, idx = jax.lax.top_k(scores, k)
    return jnp.sort(idx)


indices_list_all = []


class CustomMLPLayer:
    """JAX/Pallas port of the PyTorch CustomMLPLayer forward pass."""

    def __init__(self, weight, num, sparsity, start_num, token_sparsity,
                 memory_limit, cpu_only, name):
        # TODO(synk): memory_limit / cpu_only CPU<->GPU shuffling has no TPU
        # equivalent; everything stays in HBM.
        weight = jnp.asarray(weight, dtype=jnp.bfloat16)
        self.is_down = "down" in name
        if self.is_down:
            neuron_num = int(weight.shape[1] * sparsity)
            # Keep the down weight pre-transposed as (in_features, out_features):
            # neuron filtering is then a contiguous ROW gather, and the (K, N)
            # tile is the MXU-native RHS orientation.
            self.weight_kn = jnp.asarray(weight.T)
            # NOTE: stored in (neuron_num, out_features) layout (transposed
            # relative to the torch module's (out_features, neuron_num)).
            self.filtered_W = jnp.zeros((neuron_num, weight.shape[0]),
                                        dtype=jnp.bfloat16)
        else:
            neuron_num = int(weight.shape[0] * sparsity)
            self.filtered_W = jnp.zeros((neuron_num, weight.shape[1]),
                                        dtype=jnp.bfloat16)
        self.weight = weight
        self.num = num
        self.name = name
        self.token_sparsity = token_sparsity
        self.sparsity = sparsity
        self.cpu_only = cpu_only
        self.start_num = start_num
        self.neuron_num = neuron_num
        self.memory_limit = memory_limit
        self.activation_ratio = 0.0
        self.weight_updated = False
        self._filtered_n = neuron_num
        # 128-aligned copy fed to the decode kernel (built once per refilter).
        self._filtered_W_padded = self._pad_filtered(self.filtered_W)

    @staticmethod
    def _pad_filtered(w2d):
        r, c = w2d.shape
        rp, cp = _round_up(r, 128), _round_up(c, 128)
        if (rp, cp) == (r, c):
            return w2d
        return jnp.pad(w2d, ((0, rp - r), (0, cp - c)))

    def forward(self, x):
        # x: (batch, seq, in_features)
        global indices_list_all
        B, S, K = x.shape
        x2d = x.reshape(B * S, K)

        if S > 1:
            # ---------- prefill path: dense matmul against the full weight ----
            self.weight_updated = False
            if self.is_down:
                true_value = matmul_x_wt(x2d, self.weight_kn, w_layout="kn")
            else:
                true_value = matmul_x_wt(x2d, self.weight, w_layout="nk")
            true_value = true_value.reshape(B, S, -1)

            if self.is_down:
                squeezed_x = x2d   # flattened tokens (torch .squeeze assumes B==1)
                indices_all = get_core_neurons(
                    squeezed_x, self.token_sparsity, self.sparsity,
                    self.weight.shape[1])
                number_of_neurons = squeezed_x.shape[1]
                self.activation_ratio = (int(indices_all.shape[0])
                                         / number_of_neurons)
                # Contiguous row gather on the pre-transposed weight; padded
                # ONCE here (not per decode token).
                # TODO(synk): fuse this gather into the decode matmul via
                # PrefetchScalarGridSpec scalar-prefetched row indices.
                filtered = jnp.take(self.weight_kn, indices_all, axis=0)
                self.filtered_W = filtered                 # (n_f, out_features)
                self._filtered_n = int(indices_all.shape[0])
                self._filtered_W_padded = self._pad_filtered(filtered)
                if self.num == self.start_num + 1:
                    indices_list_all = []
                indices_list_all.append(indices_all)
        else:
            # ---------- decode path: matvec against the filtered weight -------
            if not self.is_down:
                if not self.weight_updated:
                    indices = indices_list_all[self.num - (self.start_num + 1)]
                    number_of_neurons = self.weight.shape[0]
                    self.activation_ratio = (int(indices.shape[0])
                                             / number_of_neurons)
                    filtered = jnp.take(self.weight, indices, axis=0)  # (n_f, K)
                    self.filtered_W = filtered
                    self._filtered_n = int(indices.shape[0])
                    self._filtered_W_padded = self._pad_filtered(filtered)
                    self.weight_updated = True
                out = matmul_x_wt(x2d, self._filtered_W_padded,
                                  w_layout="nk", n_valid=self._filtered_n)
            else:
                out = matmul_x_wt(x2d, self._filtered_W_padded,
                                  w_layout="kn", n_valid=self.weight.shape[0])
            true_value = out.reshape(B, S, -1)
        return true_value


# -----------------------------------------------------------------------------
# Demo / self-test
# -----------------------------------------------------------------------------
if __name__ == "__main__":
    key = jax.random.PRNGKey(0)
    k_up, k_down, k_xp, k_xd = jax.random.split(key, 4)

    hidden, inter = 256, 384          # inter not a multiple of 256 -> exercises padding
    batch, seq = 1, 16
    sparsity, token_sparsity = 0.5, 0.5

    # torch.nn.Linear layout: weight = (out_features, in_features)
    w_up = (jax.random.normal(k_up, (inter, hidden), dtype=jnp.float32)
            * 0.05).astype(jnp.bfloat16)
    w_down = (jax.random.normal(k_down, (hidden, inter), dtype=jnp.float32)
              * 0.05).astype(jnp.bfloat16)

    up_layer = CustomMLPLayer(w_up, num=1, sparsity=sparsity, start_num=0,
                              token_sparsity=token_sparsity, memory_limit=False,
                              cpu_only=False, name="up_proj")
    down_layer = CustomMLPLayer(w_down, num=1, sparsity=sparsity, start_num=0,
                                token_sparsity=token_sparsity, memory_limit=False,
                                cpu_only=False, name="down_proj")

    # ---- prefill (seq > 1): dense matmuls + core-neuron selection ----------
    x_prefill = jax.random.normal(k_xp, (batch, seq, hidden),
                                  dtype=jnp.float32).astype(jnp.bfloat16)
    up_out = up_layer.forward(x_prefill)                    # (1, 16, 384)
    down_out = down_layer.forward(up_out)                   # (1, 16, 256)

    ref_up = (x_prefill.reshape(-1, hidden).astype(jnp.float32)
              @ w_up.astype(jnp.float32).T).reshape(batch, seq, inter)
    assert jnp.allclose(up_out.astype(jnp.float32), ref_up, atol=2e-1, rtol=2e-2)

    ref_down = (up_out.reshape(-1, inter).astype(jnp.float32)
                @ w_down.astype(jnp.float32).T).reshape(batch, seq, hidden)
    assert jnp.allclose(down_out.astype(jnp.float32), ref_down,
                        atol=2e-1, rtol=2e-2)

    # ---- decode (seq == 1): matvecs against the filtered weights ------------
    x_decode = jax.random.normal(k_xd, (batch, 1, hidden),
                                 dtype=jnp.float32).astype(jnp.bfloat16)
    up_dec = up_layer.forward(x_decode)                     # (1, 1, 192)
    down_dec = down_layer.forward(up_dec)                   # (1, 1, 256)

    ref_up_dec = (x_decode.reshape(-1, hidden).astype(jnp.float32)
                  @ up_layer.filtered_W.astype(jnp.float32).T)
    assert jnp.allclose(up_dec.reshape(1, -1).astype(jnp.float32),
                        ref_up_dec, atol=2e-1, rtol=2e-2)

    # down filtered_W is stored pre-transposed: (n_filtered, hidden)
    ref_down_dec = (up_dec.reshape(1, -1).astype(jnp.float32)
                    @ down_layer.filtered_W.astype(jnp.float32))
    assert jnp.allclose(down_dec.reshape(1, -1).astype(jnp.float32),
                        ref_down_dec, atol=2e-1, rtol=2e-2)

    jax.block_until_ready((up_out, down_out, up_dec, down_dec))
    print("KERNEL_OK")
</pallas_src>

<mosaic_0001>
module attributes {stable_mosaic.version = 11 : i64} {
  func.func @_mm_nk_kernel(%arg0: i32, %arg1: i32, %arg2: i32, %arg3: memref<16x256xbf16, #tpu.memory_space<vmem>>, %arg4: memref<256x256xbf16, #tpu.memory_space<vmem>>, %arg5: memref<16x256xbf16, #tpu.memory_space<vmem>>, %arg6: memref<16x256xf32, #tpu.memory_space<vmem>>) attributes {dimension_semantics = [#tpu.dimension_semantics<parallel>, #tpu.dimension_semantics<parallel>, #tpu.dimension_semantics<arbitrary>], iteration_bounds = array<i64: 1, 2, 1>, scalar_prefetch = 0 : i64, scratch_operands = 1 : i64, tpu.core_type = #tpu.core_type<tc>, window_params = [{transform_indices = @transform_0, window_bounds = array<i64: 16, 256>}, {transform_indices = @transform_1, window_bounds = array<i64: 256, 256>}, {transform_indices = @transform_2, window_bounds = array<i64: 16, 256>}]} {
    %c0_i32 = arith.constant 0 : i32
    %0 = arith.cmpi eq, %arg2, %c0_i32 : i32
    %1 = arith.extui %0 : i1 to i32
    %c0_i32_0 = arith.constant 0 : i32
    %2 = arith.cmpi ne, %1, %c0_i32_0 : i32
    scf.if %2 {
      %cst_10 = arith.constant 0.000000e+00 : f32
      %12 = vector.broadcast %cst_10 : f32 to vector<16x256xf32>
      %c0_11 = arith.constant 0 : index
      %c0_12 = arith.constant 0 : index
      %13 = vector.load %arg6[%c0_11, %c0_12] : memref<16x256xf32, #tpu.memory_space<vmem>>, vector<16x256xf32>
      tpu.vector_store %arg6[%c0_11, %c0_12], %12 {strides = array<i32>} : memref<16x256xf32, #tpu.memory_space<vmem>>, vector<16x256xf32>,
    } else {
    }
    %c0 = arith.constant 0 : index
    %c0_1 = arith.constant 0 : index
    %3 = vector.load %arg6[%c0, %c0_1] : memref<16x256xf32, #tpu.memory_space<vmem>>, vector<16x256xf32>
    %c0_2 = arith.constant 0 : index
    %c0_3 = arith.constant 0 : index
    %4 = vector.load %arg3[%c0_2, %c0_3] : memref<16x256xbf16, #tpu.memory_space<vmem>>, vector<16x256xbf16>
    %c0_4 = arith.constant 0 : index
    %c0_5 = arith.constant 0 : index
    %5 = vector.load %arg4[%c0_4, %c0_5] : memref<256x256xbf16, #tpu.memory_space<vmem>>, vector<256x256xbf16>
    %cst = arith.constant dense<0.000000e+00> : vector<16x256xf32>
    %6 = tpu.matmul %4, %5, %cst {dimension_numbers = #tpu.dot_dimension_numbers<[1], [1], [0], [0], [0, 0, 1, 0], [], []>} : vector<16x256xbf16>, vector<256x256xbf16>, vector<16x256xf32> -> vector<16x256xf32>
    %7 = arith.addf %3, %6 : vector<16x256xf32>
    %c0_6 = arith.constant 0 : index
    %c0_7 = arith.constant 0 : index
    %8 = vector.load %arg6[%c0_6, %c0_7] : memref<16x256xf32, #tpu.memory_space<vmem>>, vector<16x256xf32>
    tpu.vector_store %arg6[%c0_6, %c0_7], %7 {strides = array<i32>} : memref<16x256xf32, #tpu.memory_space<vmem>>, vector<16x256xf32>,
    %c0_i32_8 = arith.constant 0 : i32
    %9 = arith.cmpi eq, %arg2, %c0_i32_8 : i32
    %10 = arith.extui %9 : i1 to i32
    %c0_i32_9 = arith.constant 0 : i32
    %11 = arith.cmpi ne, %10, %c0_i32_9 : i32
    scf.if %11 {
      %c0_10 = arith.constant 0 : index
      %c0_11 = arith.constant 0 : index
      %12 = vector.load %arg6[%c0_10, %c0_11] : memref<16x256xf32, #tpu.memory_space<vmem>>, vector<16x256xf32>
      %13 = arith.truncf %12 : vector<16x256xf32> to vector<16x256xbf16>
      %c0_12 = arith.constant 0 : index
      %c0_13 = arith.constant 0 : index
      %14 = vector.load %arg5[%c0_12, %c0_13] : memref<16x256xbf16, #tpu.memory_space<vmem>>, vector<16x256xbf16>
      tpu.vector_store %arg5[%c0_12, %c0_13], %13 {strides = array<i32>} : memref<16x256xbf16, #tpu.memory_space<vmem>>, vector<16x256xbf16>,
    } else {
    }
    return
  }
  func.func @transform_0(%arg0: i32, %arg1: i32, %arg2: i32) -> (i32, i32) {
    %c0_i32 = arith.constant 0 : i32
    return %arg0, %arg2 : i32, i32
  }
  func.func @transform_1(%arg0: i32, %arg1: i32, %arg2: i32) -> (i32, i32) {
    %c0_i32 = arith.constant 0 : i32
    return %arg1, %arg2 : i32, i32
  }
  func.func @transform_2(%arg0: i32, %arg1: i32, %arg2: i32) -> (i32, i32) {
    %c0_i32 = arith.constant 0 : i32
    return %arg0, %arg1 : i32, i32
  }
}

</mosaic_0001>

<bundles_post_ra>
// kernel: _matmul_tiled.1
= control target key start
LH: loop header
LB: loop body
LE: loop exit
PB: predicated region body
PF: predicated region fallthrough
CT: control target
= control target key end

     0   :  { %s854_s9 = smov 0   ;;  %s856_s10 = smov 0   ;;  %s963_s0 = inlined_call_operand.vmem [shape: bf16[16,256], index: 0, kind: input, shape index: {}]   ;;  %s964_s1 = inlined_call_operand.vmem [shape: bf16[512,256], index: 1, kind: input, shape index: {}]   ;;  %s965_s2 = inlined_call_operand.vmem [shape: bf16[16,512], index: 2, kind: output, shape index: {}]  }
   0x1   :  { %s858_s11 = smov 0   ;;  %s860_s12 = smov 0  }
   0x2   :  { %s862_s13 = smov 0  }
   0x3 LB: > { %s653_s14 = sadd.s32 4294967295, %s837_s13   ;;  %s27_s15 = sadd.s32 1, %s833_s12  ;;  %s837_s13 = sphi %s862_s13, %s12_s13   ;;  %s833_s12 = sphi %s860_s12, %s970_s12   ;;  %s829_s11 = sphi %s858_s11, %s969_s11   ;;  %s825_s10 = sphi %s856_s10, %s968_s10   ;;  %s821_s9 = sphi %s854_s9, %s967_s9  }
   0x4   : > { %p29_p0 = scmp.ge.s32.totalorder %s27_s15, 2  ;;  %s96_s16 = sadd.s32 1, %s825_s10 }
   0x5   : > { %p106_p1 = scmp.ne.s32.totalorder %s825_s10, %s821_s9  ;;  %p107_p2 = scmp.eq.s32.totalorder %s653_s14, 1 }
   0x6   : > { %s972_s15 = smov (%p29_p0, %s27_s15), 0  ;;  %p658_p4 = scmp.ge.s32.totalorder %s837_s13, 1 }
   0x7   : > { %p886_p3 = por %p107_p2, %p106_p1  ;;  %s92_s18 = ssub.s32 %s833_s12, %s972_s15 }
   0x8   : > { %p161_p5 = scmp.lt.s32.totalorder %s837_s13, 3  ;;  %p94_p6 = scmp.eq.s32.totalorder %s92_s18, 0 }
   0xa   : > { %p162_p7 = pnand %p658_p4, %p161_p5 }
   0xb   : > { %s895_s19 = scalar_select %p94_p6, %s825_s10, %s96_s16  }
   0xc   : > { %165 = sbr.rel (%p162_p7) target bundleno = 359 (0x167), region = 28  ;;  %s660_s20 = sshll.u32 (!%p162_p7), %s829_s11, 5 }
   0xd   : > { %p211_p8 = scmp.lt.s32.totalorder (!%p162_p7), %s660_s20, 63  ;;  %s194_s29 = sand.u32 (!%p162_p7), 1, %s821_s9  }
   0xe   : > { %s659_s30 = sshll.u32 (!%p162_p7), %s194_s29, 4 }
   0xf   : > { %s196_s3 = scalar_lea.vmem (!%p162_p7), [#allocation3], %s659_s30 }
  0x11   : > { %v798_v0 = vld [vmem:[%s963_s0 + $0x4] ss:$8 sps:$4 sm:$0xff]   ;;  %s974_s20 = smov (!%p211_p8, %s660_s20), 63  ;;  %v796_v33 = vld [vmem:[%s963_s0] ss:$8 sps:$4 sm:$0xff]   ;;  %s707_s4 = sshll.u32 (%p886_p3), %s829_s11, 3 }
  0x12   : > { %471 = vmatprep.mubr.bf16.mxu0 %v798_v0  ;;  %s704_s23 = sshll.u32 %s974_s20, 3  ;;  %s523_s7 = scalar_lea.vmem (%p886_p3), %s965_s2, %s707_s4 }
  0x13   : > { %s904_s26 = scalar_lea.vmem %s964_s1, %s704_s23 }
  0x14   : > { %v748_v1 = vld [vmem:[%s904_s26 + $0x74] ss:$8 sps:$4 sm:$0xff]   ;;  %v750_v2 = vld [vmem:[%s904_s26 + $0x70] ss:$8 sps:$4 sm:$0xff]   ;;  %v751_v3 = vld [vmem:[%s904_s26 + $0x64] ss:$8 sps:$4 sm:$0xff]  }
  0x15   : > { %439 = vmatprep.subr.bf16.mxu0 %v748_v1  ;;  %v753_v4 = vld [vmem:[%s904_s26 + $0x60] ss:$8 sps:$4 sm:$0xff]   ;;  %v754_v5 = vld [vmem:[%s904_s26 + $0x54] ss:$8 sps:$4 sm:$0xff]   ;;  %v756_v6 = vld [vmem:[%s904_s26 + $0x50] ss:$8 sps:$4 sm:$0xff]  }
  0x16   : > { %440 = vmatpush1.bf16.xpose.msra.mxu0 %v750_v2  ;;  %v757_v7 = vld [vmem:[%s904_s26 + $0x44] ss:$8 sps:$4 sm:$0xff]   ;;  %v759_v8 = vld [vmem:[%s904_s26 + $0x40] ss:$8 sps:$4 sm:$0xff]   ;;  %v760_v9 = vld [vmem:[%s904_s26 + $0x34] ss:$8 sps:$4 sm:$0xff]  }
  0x17   : > { %441 = vmatprep.subr.bf16.mxu0 %v751_v3  ;;  %v762_v10 = vld [vmem:[%s904_s26 + $0x30] ss:$8 sps:$4 sm:$0xff]   ;;  %v763_v11 = vld [vmem:[%s904_s26 + $0x24] ss:$8 sps:$4 sm:$0xff]   ;;  %v765_v12 = vld [vmem:[%s904_s26 + $0x20] ss:$8 sps:$4 sm:$0xff]  }
  0x18   : > { %v766_v13 = vld [vmem:[%s904_s26 + $0x14] ss:$8 sps:$4 sm:$0xff]   ;;  %v768_v14 = vld [vmem:[%s904_s26 + $0x10] ss:$8 sps:$4 sm:$0xff]   ;;  %v769_v15 = vld [vmem:[%s904_s26 + $0x4] ss:$8 sps:$4 sm:$0xff]  }
  0x19   : > { %v771_v16 = vld [vmem:[%s904_s26] ss:$8 sps:$4 sm:$0xff]   ;;  %v772_v17 = vld [vmem:[%s904_s26 + $0xf4] ss:$8 sps:$4 sm:$0xff]   ;;  %v774_v18 = vld [vmem:[%s904_s26 + $0xf0] ss:$8 sps:$4 sm:$0xff]  }
  0x1a   : > { %v775_v19 = vld [vmem:[%s904_s26 + $0xe4] ss:$8 sps:$4 sm:$0xff]   ;;  %v777_v20 = vld [vmem:[%s904_s26 + $0xe0] ss:$8 sps:$4 sm:$0xff]   ;;  %v778_v21 = vld [vmem:[%s904_s26 + $0xd4] ss:$8 sps:$4 sm:$0xff]  }
  0x1b   : > { %v780_v22 = vld [vmem:[%s904_s26 + $0xd0] ss:$8 sps:$4 sm:$0xff]   ;;  %v781_v23 = vld [vmem:[%s904_s26 + $0xc4] ss:$8 sps:$4 sm:$0xff]   ;;  %v783_v24 = vld [vmem:[%s904_s26 + $0xc0] ss:$8 sps:$4 sm:$0xff]  }
  0x1c   : > { %v784_v25 = vld [vmem:[%s904_s26 + $0xb4] ss:$8 sps:$4 sm:$0xff]   ;;  %v786_v26 = vld [vmem:[%s904_s26 + $0xb0] ss:$8 sps:$4 sm:$0xff]   ;;  %v787_v27 = vld [vmem:[%s904_s26 + $0xa4] ss:$8 sps:$4 sm:$0xff]  }
  0x1d   : > { %v789_v28 = vld [vmem:[%s904_s26 + $0xa0] ss:$8 sps:$4 sm:$0xff]   ;;  %v790_v29 = vld [vmem:[%s904_s26 + $0x94] ss:$8 sps:$4 sm:$0xff]   ;;  %v792_v30 = vld [vmem:[%s904_s26 + $0x90] ss:$8 sps:$4 sm:$0xff]  }
  0x1e   : > { %442 = vmatpush1.bf16.xpose.msra.mxu0 %v753_v4  ;;  %v793_v31 = vld [vmem:[%s904_s26 + $0x84] ss:$8 sps:$4 sm:$0xff]   ;;  %v795_v32 = vld [vmem:[%s904_s26 + $0x80] ss:$8 sps:$4 sm:$0xff]  }
  0x1f   : > { %443 = vmatprep.subr.bf16.mxu0 %v754_v5 }
  0x26   : > { %444 = vmatpush1.bf16.xpose.msra.mxu0 %v756_v6 }
  0x27   : > { %445 = vmatprep.subr.bf16.mxu0 %v757_v7 }
  0x2e   : > { %446 = vmatpush1.bf16.xpose.msra.mxu0 %v759_v8 }
  0x2f   : > { %447 = vmatprep.subr.bf16.mxu0 %v760_v9 }
  0x36   : > { %448 = vmatpush1.bf16.xpose.msra.mxu0 %v762_v10 }
  0x37   : > { %449 = vmatprep.subr.bf16.mxu0 %v763_v11 }
  0x3e   : > { %450 = vmatpush1.bf16.xpose.msra.mxu0 %v765_v12 }
  0x3f   : > { %451 = vmatprep.subr.bf16.mxu0 %v766_v13 }
  0x46   : > { %452 = vmatpush1.bf16.xpose.msra.mxu0 %v768_v14 }
  0x47   : > { %453 = vmatprep.subr.bf16.mxu0 %v769_v15 }
  0x4e   : > { %454 = vmatpush1.bf16.xpose.msra.mxu0 %v771_v16 }
  0x4f   : > { %455 = vmatprep.subr.bf16.mxu0 %v772_v17 }
  0x56   : > { %456 = vmatpush2.bf16.xpose.msra.mxu0 %v774_v18 }
  0x57   : > { %457 = vmatprep.subr.bf16.mxu0 %v775_v19 }
  0x5e   : > { %458 = vmatpush2.bf16.xpose.msra.mxu0 %v777_v20 }
  0x5f   : > { %459 = vmatprep.subr.bf16.mxu0 %v778_v21 }
  0x66   : > { %460 = vmatpush2.bf16.xpose.msra.mxu0 %v780_v22 }
  0x67   : > { %461 = vmatprep.subr.bf16.mxu0 %v781_v23 }
  0x6e   : > { %462 = vmatpush2.bf16.xpose.msra.mxu0 %v783_v24 }
  0x6f   : > { %463 = vmatprep.subr.bf16.mxu0 %v784_v25 }
  0x76   : > { %464 = vmatpush2.bf16.xpose.msra.mxu0 %v786_v26 }
  0x77   : > { %465 = vmatprep.subr.bf16.mxu0 %v787_v27 }
  0x7e   : > { %466 = vmatpush2.bf16.xpose.msra.mxu0 %v789_v28 }
  0x7f   : > { %467 = vmatprep.subr.bf16.mxu0 %v790_v29 }
  0x86   : > { %468 = vmatpush2.bf16.xpose.msra.mxu0 %v792_v30 }
  0x87   : > { %469 = vmatprep.subr.bf16.mxu0 %v793_v31 }
  0x8e   : > { %470 = vmatpush2.bf16.xpose.msra.mxu0 %v795_v32 }
  0x95   : > { %472 = vmatmul.mubr.bf16.vlgmr.msra.gmra.mxu0 %v796_v33 }
 0x155   : > { %v473_v34 = vpop.f32.mrf.mxu0 }
 0x157   : > { %v475_v35 = vpop.f32.mrf.mxu0 }
 0x158   : > { %v705_v36 = vpack.c.bf16 %v475_v35, %v473_v34 }
 0x159   : > { %v477_v37 = vpop.f32.mrf.mxu0 }
 0x15a   : > { %509 = vst [vmem:[%s196_s3] sm:$0xff] %v705_v36  ;;  %517 = sbr.rel (!%p886_p3) target bundleno = 359 (0x167), region = 40 }
 0x15b   : > { %v479_v38 = vpop.f32.mrf.mxu0 }
 0x15c   : > { %v706_v39 = vpack.c.bf16 %v479_v38, %v477_v37 }
 0x15e   : > { %510 = vst [vmem:[%s196_s3 + $0x8] sm:$0xff] %v706_v39 }
 0x161   : > { %v554_v40 = vld [vmem:[%s196_s3] sm:$0xff] }
 0x162   : > { %555 = vst [vmem:[%s523_s7] sm:$0xff] %v554_v40 }
 0x165   : > { %v556_v41 = vld [vmem:[%s196_s3 + $0x8] sm:$0xff] }
 0x166   : > { %557 = vst [vmem:[%s523_s7 + $0x10] sm:$0xff] %v556_v41 }
 0x167 PF: > { %s12_s13 = sadd.s32 1, %s837_s13   ;;  %s967_s9 = smov %s825_s10 }
 0x168   : > { %p9_p9 = scmp.ge.s32.totalorder %s12_s13, 4   ;;  %s968_s10 = smov %s895_s19 }
 0x169   : > { %s969_s11 = smov %s833_s12  ;;  %s970_s12 = smov %s972_s15 }
 0x16a   :  { %11 = sbr.rel (!%p9_p9) target bundleno = 3 (0x3), region = 107 }

</bundles_post_ra>
